<compile_context>
chip_gen: v7x
topology: tpu7x:2x2x1
jax: 0.10.0
libtpu: 0.0.40
codegen_flags: <defaults>
</compile_context>

<pallas_src>
import functools
import math

import jax
import jax.numpy as jnp
from jax import lax
from jax.experimental import pallas as pl
from jax.experimental.pallas import tpu as pltpu

_NEG = -1e30   # "-inf" stand-in that never produces inf-inf NaNs


def _round_up(x, m):
    return ((x + m - 1) // m) * m


# ---------------------------------------------------------------------------
# Pass 1 (grid over N tiles, "parallel"):
#   Q = q(feats) = Tanh(ReLU(feats @ W1 + b1) @ W2 + b2)          -> (N_pad, D)
#   lane-aligned compute-dtype copy of feats (zero tail rows)      -> (N_pad, h)
#   per-tile per-class argmax of patch predictions: gathered q rows (nt, Cp, D)
#   and tile maxima (nt, Cp, 1); the cross-tile reduce is a tiny XLA op.
# ---------------------------------------------------------------------------
def _q_select_kernel(feats_ref, preds_ref, w1_ref, b1_ref, w2_ref, b2_ref,
                     q_ref, featsb_ref, cand_ref, tmax_ref,
                     *, n_valid, tile_n):
    t = pl.program_id(0)
    row0 = t * tile_n

    # feats tile: last tile may be partial -> mask OOB rows to zero (garbage-safe).
    x = feats_ref[...]                                             # (TN, h) f32
    row = lax.broadcasted_iota(jnp.int32, x.shape, 0) + row0
    x = jnp.where(row < n_valid, x, 0.0)
    xb = x.astype(featsb_ref.dtype)                                # bf16 before the MXU
    featsb_ref[...] = xb                                           # streamed by pass 2

    h1 = jnp.dot(xb, w1_ref[...], preferred_element_type=jnp.float32) + b1_ref[...]
    h1 = jnp.maximum(h1, 0.0)
    h2 = jnp.dot(h1.astype(w2_ref.dtype), w2_ref[...],
                 preferred_element_type=jnp.float32) + b2_ref[...]
    qf = jnp.tanh(h2)                                              # (TN, D) f32
    q_ref[...] = qf.astype(q_ref.dtype)

    # per-class argmax of patch predictions within this tile (first max wins)
    preds = preds_ref[...]                                         # (Cp, TN) f32
    col = lax.broadcasted_iota(jnp.int32, preds.shape, 1)
    preds = jnp.where(col + row0 < n_valid, preds, _NEG)           # mask OOB cols
    tile_max = jnp.max(preds, axis=-1, keepdims=True)              # (Cp, 1)
    first = jnp.min(jnp.where(preds == tile_max, col, tile_n),
                    axis=-1, keepdims=True)
    onehot = (col == first).astype(jnp.float32)                    # (Cp, TN)
    # one-hot gather of the matching q rows, kept in f32 (q is row-wise, so
    # q(m_feats) == Q[idx]; the second MLP pass is eliminated)
    cand_ref[0] = jnp.dot(onehot, qf, preferred_element_type=jnp.float32)
    tmax_ref[0] = tile_max


# ---------------------------------------------------------------------------
# Pass 2 (grid (2 phases, N tiles), "arbitrary"):
#   phase 0: global softmax statistics (online max / sum) of q_max @ Q^T / sqrt(D)
#   phase 1: exact attention tiles written lane-dense + bag accumulated in f32
# ---------------------------------------------------------------------------
def _attention_kernel(qmax_ref, q_ref, feats_ref, attn_ref, bag_ref,
                      m_sc, l_sc, acc_sc, *, n_valid, tile_n, scale):
    ph = pl.program_id(0)
    t = pl.program_id(1)
    nt = pl.num_programs(1)

    @pl.when((ph == 0) & (t == 0))
    def _init():
        m_sc[...] = jnp.full_like(m_sc, _NEG)
        l_sc[...] = jnp.zeros_like(l_sc)
        acc_sc[...] = jnp.zeros_like(acc_sc)

    q_tile = q_ref[...].astype(jnp.float32)                        # (TN, D)
    s = lax.dot_general(qmax_ref[...], q_tile, (((1,), (1,)), ((), ())),
                        preferred_element_type=jnp.float32)        # (Cp, TN)
    s = s * jnp.float32(scale)
    col = t * tile_n + lax.broadcasted_iota(jnp.int32, s.shape, 1)
    s = jnp.where(col < n_valid, s, _NEG)                          # mask padding cols

    @pl.when(ph == 0)
    def _softmax_stats():
        new_m = jnp.maximum(m_sc[...], jnp.max(s, axis=-1, keepdims=True))
        l_sc[...] = (l_sc[...] * jnp.exp(m_sc[...] - new_m)
                     + jnp.sum(jnp.exp(s - new_m), axis=-1, keepdims=True))
        m_sc[...] = new_m

    @pl.when(ph == 1)
    def _attend():
        attn = jnp.exp(s - m_sc[...]) / l_sc[...]                  # exact softmax
        attn_ref[...] = attn                                       # (Cp, TN) f32
        acc_sc[...] += jnp.dot(attn.astype(feats_ref.dtype), feats_ref[...],
                               preferred_element_type=jnp.float32)  # (Cp, h)

    @pl.when((ph == 1) & (t == nt - 1))
    def _finalize():
        bag_ref[...] = acc_sc[...]


def bclassifier_forward(feats, patch_predictions, params,
                        compute_dtype=jnp.bfloat16):
    """feats: (1, N, h); patch_predictions: (1, N, C).

    Returns (logits (1, C), attn_weights (1, C, N), bag_representations (1, C, h)).
    """
    _, N, h = feats.shape
    C = patch_predictions.shape[-1]
    w1, b1, w2, b2, fccw, fccb = params
    D = w1.shape[1]                           # q()/attention width (128 in DSMIL)

    f32 = jnp.float32
    TN = min(1024, _round_up(N, 128))         # rows per tile (multiple of 128)
    nt = (N + TN - 1) // TN
    N_pad = nt * TN
    Cp = _round_up(C, 8)                      # class dim -> full sublanes

    feats2d = feats[0]                                             # raw f32, unpadded
    preds_t = jnp.full((Cp, N), _NEG, f32).at[:C, :].set(          # tiny (Cp x N)
        patch_predictions[0].T.astype(f32))
    w1_c = w1.astype(compute_dtype)
    b1_r = b1.reshape(1, D).astype(f32)
    w2_c = w2.astype(compute_dtype)
    b2_r = b2.reshape(1, D).astype(f32)

    # ---- pass 1: Q = q(feats), bf16 feats copy, per-tile argmax candidates ----
    kernel1 = functools.partial(_q_select_kernel, n_valid=N, tile_n=TN)
    q_all, featsb, cand, tmax = pl.pallas_call(
        kernel1,
        out_shape=(
            jax.ShapeDtypeStruct((N_pad, D), compute_dtype),   # Q
            jax.ShapeDtypeStruct((N_pad, h), compute_dtype),   # feats copy for pass 2
            jax.ShapeDtypeStruct((nt, Cp, D), f32),            # per-tile q_max candidates
            jax.ShapeDtypeStruct((nt, Cp, 1), f32),            # per-tile prediction maxima
        ),
        grid_spec=pltpu.PrefetchScalarGridSpec(
            num_scalar_prefetch=0,
            grid=(nt,),
            in_specs=[
                pl.BlockSpec((TN, h), lambda t: (t, 0)),       # feats (partial tail masked)
                pl.BlockSpec((Cp, TN), lambda t: (0, t)),      # preds (partial tail masked)
                pl.BlockSpec((h, D), lambda t: (0, 0)),
                pl.BlockSpec((1, D), lambda t: (0, 0)),
                pl.BlockSpec((D, D), lambda t: (0, 0)),
                pl.BlockSpec((1, D), lambda t: (0, 0)),
            ],
            out_specs=(
                pl.BlockSpec((TN, D), lambda t: (t, 0)),
                pl.BlockSpec((TN, h), lambda t: (t, 0)),
                pl.BlockSpec((1, Cp, D), lambda t: (t, 0, 0)),
                pl.BlockSpec((1, Cp, 1), lambda t: (t, 0, 0)),
            ),
        ),
        compiler_params=pltpu.CompilerParams(
            dimension_semantics=("parallel",),
            vmem_limit_bytes=48 * 1024 * 1024),
    )(feats2d, preds_t, w1_c, b1_r, w2_c, b2_r)

    # cross-tile argmax reduction (tiny: nt x Cp) -> q_max rows in f32
    best_tile = jnp.argmax(tmax[:, :, 0], axis=0)                  # (Cp,) first max wins
    q_max = cand[best_tile, jnp.arange(Cp)]                        # (Cp, D) f32

    # ---- pass 2: two-sweep exact softmax attention + bag accumulation ---------
    kernel2 = functools.partial(_attention_kernel, n_valid=N, tile_n=TN,
                                scale=1.0 / math.sqrt(float(D)))
    attn_p, bag_p = pl.pallas_call(
        kernel2,
        out_shape=(
            jax.ShapeDtypeStruct((Cp, N_pad), f32),   # attention weights
            jax.ShapeDtypeStruct((Cp, h), f32),       # bag representations
        ),
        grid_spec=pltpu.PrefetchScalarGridSpec(
            num_scalar_prefetch=0,
            grid=(2, nt),                             # (phase, N tile)
            in_specs=[
                pl.BlockSpec((Cp, D), lambda p, t: (0, 0)),
                pl.BlockSpec((TN, D), lambda p, t: (t, 0)),
                # feats only streamed in phase 1 (bag accumulation)
                pl.BlockSpec((TN, h), lambda p, t: (jnp.where(p == 1, t, 0), 0)),
            ],
            out_specs=(
                pl.BlockSpec((Cp, TN), lambda p, t: (0, jnp.where(p == 1, t, 0))),
                pl.BlockSpec((Cp, h), lambda p, t: (0, 0)),
            ),
            scratch_shapes=[
                pltpu.VMEM((Cp, 1), f32),             # softmax running max
                pltpu.VMEM((Cp, 1), f32),             # softmax running sum
                pltpu.VMEM((Cp, h), f32),             # bag accumulator
            ],
        ),
        compiler_params=pltpu.CompilerParams(
            dimension_semantics=("arbitrary", "arbitrary"),
            vmem_limit_bytes=32 * 1024 * 1024),
    )(q_max, q_all, featsb)

    bag = bag_p[:C, :]
    # Conv1d(C, C, kernel_size=h) epilogue as a tiny XLA einsum (O(C^2 h)).
    logits = (jnp.einsum('oik,ik->o', fccw.astype(f32), bag,
                         precision='highest')[None, :] + fccb.astype(f32))
    attn = attn_p[:C, :N][None, :, :]
    return logits, attn, bag[None, :, :]


def init_params(key, input_size, n_classes, hidden=128):
    """Deterministic PyTorch-style uniform(-1/sqrt(fan_in), 1/sqrt(fan_in)) init."""
    ks = jax.random.split(key, 6)

    def unif(k, shape, fan_in):
        bound = 1.0 / math.sqrt(fan_in)
        return jax.random.uniform(k, shape, jnp.float32, -bound, bound)

    # Linear weights stored as (in, out) so the kernel does x @ W.
    w1 = unif(ks[0], (input_size, hidden), input_size)
    b1 = unif(ks[1], (1, hidden), input_size)
    w2 = unif(ks[2], (hidden, hidden), hidden)
    b2 = unif(ks[3], (1, hidden), hidden)
    # Conv1d weight kept in PyTorch layout (out_C, in_C, kernel_size=h).
    fccw = unif(ks[4], (n_classes, n_classes, input_size), n_classes * input_size)
    fccb = unif(ks[5], (1, n_classes), n_classes * input_size)
    return (w1, b1, w2, b2, fccw, fccb)


def _reference_forward(feats, preds, params):
    # Pure-JAX reference mirroring the PyTorch forward (CPU/inference branch).
    w1, b1, w2, b2, fccw, fccb = params
    with jax.default_matmul_precision("highest"):
        f = feats[0]
        p = preds[0]
        q = lambda x: jnp.tanh(jnp.maximum(x @ w1 + b1, 0.0) @ w2 + b2)
        Q = q(f)
        idx = jnp.argmax(p, axis=0)                 # top-1 patch per class
        m_feats = f[idx]
        q_max = q(m_feats)
        scores = (q_max @ Q.T) / jnp.sqrt(jnp.float32(Q.shape[-1]))
        attn = jax.nn.softmax(scores, axis=-1)
        bag = attn @ f
        logits = jnp.einsum('oik,ik->o', fccw, bag)[None, :] + fccb
    return logits, attn[None], bag[None]


if __name__ == "__main__":
    key = jax.random.PRNGKey(0)

    # small case, a single ragged tile, and a multi-tile case with a ragged tail
    # (also exercises class-dim padding with C=5).
    for (N, H, C) in [(8, 32, 4), (700, 64, 4), (2500, 64, 5)]:
        key, kparam, kf, kp = jax.random.split(key, 4)
        params = init_params(kparam, input_size=H, n_classes=C)
        feats = jax.random.normal(kf, (1, N, H), jnp.float32)
        preds = jax.random.normal(kp, (1, N, C), jnp.float32)

        ref = _reference_forward(feats, preds, params)

        # default bf16 streaming path (loose tol), plus an f32 path (tighter tol)
        for dtype, tol in ((jnp.bfloat16, 3e-2), (jnp.float32, 2e-2)):
            fwd = jax.jit(functools.partial(bclassifier_forward, params=params,
                                            compute_dtype=dtype))
            logits, attn, bag = jax.block_until_ready(fwd(feats, preds))
            assert logits.shape == (1, C)
            assert attn.shape == (1, C, N)
            assert bag.shape == (1, C, H)
            for got, want in zip((logits, attn, bag), ref):
                assert jnp.allclose(got, want, atol=tol, rtol=tol), (N, H, C, dtype)

    print("KERNEL_OK")
</pallas_src>

<mosaic_0001>
module attributes {stable_mosaic.version = 11 : i64} {
  func.func @_q_select_kernel(%arg0: i32, %arg1: memref<128x32xf32, #tpu.memory_space<vmem>>, %arg2: memref<8x128xf32, #tpu.memory_space<vmem>>, %arg3: memref<32x128xbf16, #tpu.memory_space<vmem>>, %arg4: memref<1x128xf32, #tpu.memory_space<vmem>>, %arg5: memref<128x128xbf16, #tpu.memory_space<vmem>>, %arg6: memref<1x128xf32, #tpu.memory_space<vmem>>, %arg7: memref<128x128xbf16, #tpu.memory_space<vmem>>, %arg8: memref<128x32xbf16, #tpu.memory_space<vmem>>, %arg9: memref<1x8x128xf32, #tpu.memory_space<vmem>>, %arg10: memref<1x8x1xf32, #tpu.memory_space<vmem>>) attributes {dimension_semantics = [#tpu.dimension_semantics<parallel>], iteration_bounds = array<i64: 1>, scalar_prefetch = 0 : i64, scratch_operands = 0 : i64, tpu.core_type = #tpu.core_type<tc>, window_params = [{transform_indices = @transform_0, window_bounds = array<i64: 128, 32>}, {transform_indices = @transform_1, window_bounds = array<i64: 8, 128>}, {pipeline_mode = #tpu.pipeline_mode<synchronous>, transform_indices = @transform_2, window_bounds = array<i64: 32, 128>}, {pipeline_mode = #tpu.pipeline_mode<synchronous>, transform_indices = @transform_3, window_bounds = array<i64: 1, 128>}, {pipeline_mode = #tpu.pipeline_mode<synchronous>, transform_indices = @transform_4, window_bounds = array<i64: 128, 128>}, {pipeline_mode = #tpu.pipeline_mode<synchronous>, transform_indices = @transform_5, window_bounds = array<i64: 1, 128>}, {transform_indices = @transform_6, window_bounds = array<i64: 128, 128>}, {transform_indices = @transform_7, window_bounds = array<i64: 128, 32>}, {transform_indices = @transform_8, window_bounds = array<i64: 1, 8, 128>}, {transform_indices = @transform_9, window_bounds = array<i64: 1, 8, 1>}]} {
    %c128_i32 = arith.constant 128 : i32
    %0 = arith.muli %arg0, %c128_i32 : i32
    %c0 = arith.constant 0 : index
    %c0_0 = arith.constant 0 : index
    %1 = vector.load %arg1[%c0, %c0_0] : memref<128x32xf32, #tpu.memory_space<vmem>>, vector<128x32xf32>
    %2 = tpu.iota {dimensions = array<i32: 0>} : vector<128x32xi32>
    %3 = vector.broadcast %0 : i32 to vector<128x32xi32>
    %4 = arith.addi %2, %3 : vector<128x32xi32>
    %c8_i32 = arith.constant 8 : i32
    %5 = vector.broadcast %c8_i32 : i32 to vector<128x32xi32>
    %6 = arith.cmpi slt, %4, %5 : vector<128x32xi32>
    %cst = arith.constant 0.000000e+00 : f32
    %7 = vector.broadcast %cst : f32 to vector<128x32xf32>
    %8 = arith.select %6, %1, %7 : vector<128x32xi1>, vector<128x32xf32>
    %9 = arith.truncf %8 : vector<128x32xf32> to vector<128x32xbf16>
    %c0_1 = arith.constant 0 : index
    %c0_2 = arith.constant 0 : index
    %10 = vector.load %arg8[%c0_1, %c0_2] : memref<128x32xbf16, #tpu.memory_space<vmem>>, vector<128x32xbf16>
    tpu.vector_store %arg8[%c0_1, %c0_2], %9 {strides = array<i32>} : memref<128x32xbf16, #tpu.memory_space<vmem>>, vector<128x32xbf16>,
    %c0_3 = arith.constant 0 : index
    %c0_4 = arith.constant 0 : index
    %11 = vector.load %arg3[%c0_3, %c0_4] : memref<32x128xbf16, #tpu.memory_space<vmem>>, vector<32x128xbf16>
    %cst_5 = arith.constant dense<0.000000e+00> : vector<128x128xf32>
    %12 = tpu.matmul %9, %11, %cst_5 {dimension_numbers = #tpu.dot_dimension_numbers<[1], [0], [0], [1], [0, 0, 1, 1], [], []>} : vector<128x32xbf16>, vector<32x128xbf16>, vector<128x128xf32> -> vector<128x128xf32>
    %c0_6 = arith.constant 0 : index
    %c0_7 = arith.constant 0 : index
    %13 = vector.load %arg4[%c0_6, %c0_7] : memref<1x128xf32, #tpu.memory_space<vmem>>, vector<1x128xf32>
    %14 = vector.broadcast %13 : vector<1x128xf32> to vector<128x128xf32>
    %15 = arith.addf %12, %14 : vector<128x128xf32>
    %cst_8 = arith.constant 0.000000e+00 : f32
    %16 = vector.broadcast %cst_8 : f32 to vector<128x128xf32>
    %17 = arith.maximumf %15, %16 : vector<128x128xf32>
    %18 = arith.truncf %17 : vector<128x128xf32> to vector<128x128xbf16>
    %c0_9 = arith.constant 0 : index
    %c0_10 = arith.constant 0 : index
    %19 = vector.load %arg5[%c0_9, %c0_10] : memref<128x128xbf16, #tpu.memory_space<vmem>>, vector<128x128xbf16>
    %cst_11 = arith.constant dense<0.000000e+00> : vector<128x128xf32>
    %20 = tpu.matmul %18, %19, %cst_11 {dimension_numbers = #tpu.dot_dimension_numbers<[1], [0], [0], [1], [0, 0, 1, 1], [], []>} : vector<128x128xbf16>, vector<128x128xbf16>, vector<128x128xf32> -> vector<128x128xf32>
    %c0_12 = arith.constant 0 : index
    %c0_13 = arith.constant 0 : index
    %21 = vector.load %arg6[%c0_12, %c0_13] : memref<1x128xf32, #tpu.memory_space<vmem>>, vector<1x128xf32>
    %22 = vector.broadcast %21 : vector<1x128xf32> to vector<128x128xf32>
    %23 = arith.addf %20, %22 : vector<128x128xf32>
    %24 = math.tanh %23 : vector<128x128xf32>
    %25 = arith.truncf %24 : vector<128x128xf32> to vector<128x128xbf16>
    %c0_14 = arith.constant 0 : index
    %c0_15 = arith.constant 0 : index
    %26 = vector.load %arg7[%c0_14, %c0_15] : memref<128x128xbf16, #tpu.memory_space<vmem>>, vector<128x128xbf16>
    tpu.vector_store %arg7[%c0_14, %c0_15], %25 {strides = array<i32>} : memref<128x128xbf16, #tpu.memory_space<vmem>>, vector<128x128xbf16>,
    %c0_16 = arith.constant 0 : index
    %c0_17 = arith.constant 0 : index
    %27 = vector.load %arg2[%c0_16, %c0_17] : memref<8x128xf32, #tpu.memory_space<vmem>>, vector<8x128xf32>
    %28 = tpu.iota {dimensions = array<i32: 1>} : vector<8x128xi32>
    %29 = vector.broadcast %0 : i32 to vector<8x128xi32>
    %30 = arith.addi %28, %29 : vector<8x128xi32>
    %c8_i32_18 = arith.constant 8 : i32
    %31 = vector.broadcast %c8_i32_18 : i32 to vector<8x128xi32>
    %32 = arith.cmpi slt, %30, %31 : vector<8x128xi32>
    %cst_19 = arith.constant -1.000000e+30 : f32
    %33 = vector.broadcast %cst_19 : f32 to vector<8x128xf32>
    %34 = arith.select %32, %27, %33 : vector<8x128xi1>, vector<8x128xf32>
    %cst_20 = arith.constant dense<0xFF800000> : vector<8xf32>
    %35 = vector.multi_reduction <maximumf>, %34, %cst_20 [1] : vector<8x128xf32> to vector<8xf32>
    %36 = vector.shape_cast %35 : vector<8xf32> to vector<8x1xf32>
    %37 = vector.broadcast %36 : vector<8x1xf32> to vector<8x128xf32>
    %38 = arith.cmpf oeq, %34, %37 : vector<8x128xf32>
    %c128_i32_21 = arith.constant 128 : i32
    %39 = vector.broadcast %c128_i32_21 : i32 to vector<8x128xi32>
    %40 = arith.select %38, %28, %39 : vector<8x128xi1>, vector<8x128xi32>
    %cst_22 = arith.constant dense<2147483647> : vector<8xi32>
    %41 = vector.multi_reduction <minsi>, %40, %cst_22 [1] : vector<8x128xi32> to vector<8xi32>
    %42 = vector.shape_cast %41 : vector<8xi32> to vector<8x1xi32>
    %43 = vector.broadcast %42 : vector<8x1xi32> to vector<8x128xi32>
    %44 = arith.cmpi eq, %28, %43 : vector<8x128xi32>
    %45 = arith.extui %44 : vector<8x128xi1> to vector<8x128xi32>
    %46 = arith.sitofp %45 : vector<8x128xi32> to vector<8x128xf32>
    %cst_23 = arith.constant dense<0.000000e+00> : vector<8x128xf32>
    %47 = tpu.matmul %46, %24, %cst_23 {dimension_numbers = #tpu.dot_dimension_numbers<[1], [0], [0], [1], [0, 0, 1, 1], [], []>} : vector<8x128xf32>, vector<128x128xf32>, vector<8x128xf32> -> vector<8x128xf32>
    %c0_24 = arith.constant 0 : index
    %c0_25 = arith.constant 0 : index
    %c0_26 = arith.constant 0 : index
    %48 = vector.load %arg9[%c0_24, %c0_25, %c0_26] : memref<1x8x128xf32, #tpu.memory_space<vmem>>, vector<1x8x128xf32>
    %49 = vector.shape_cast %48 : vector<1x8x128xf32> to vector<8x128xf32>
    %50 = vector.shape_cast %47 : vector<8x128xf32> to vector<1x8x128xf32>
    tpu.vector_store %arg9[%c0_24, %c0_25, %c0_26], %50 {strides = array<i32>} : memref<1x8x128xf32, #tpu.memory_space<vmem>>, vector<1x8x128xf32>,
    %c0_27 = arith.constant 0 : index
    %c0_28 = arith.constant 0 : index
    %c0_29 = arith.constant 0 : index
    %51 = vector.load %arg10[%c0_27, %c0_28, %c0_29] : memref<1x8x1xf32, #tpu.memory_space<vmem>>, vector<1x8x1xf32>
    %52 = vector.shape_cast %51 : vector<1x8x1xf32> to vector<8x1xf32>
    %53 = vector.shape_cast %36 : vector<8x1xf32> to vector<1x8x1xf32>
    tpu.vector_store %arg10[%c0_27, %c0_28, %c0_29], %53 {strides = array<i32>} : memref<1x8x1xf32, #tpu.memory_space<vmem>>, vector<1x8x1xf32>,
    return
  }
  func.func @transform_0(%arg0: i32) -> (i32, i32) {
    %c0_i32 = arith.constant 0 : i32
    %c0_i32_0 = arith.constant 0 : i32
    return %arg0, %c0_i32 : i32, i32
  }
  func.func @transform_1(%arg0: i32) -> (i32, i32) {
    %c0_i32 = arith.constant 0 : i32
    %c0_i32_0 = arith.constant 0 : i32
    return %c0_i32, %arg0 : i32, i32
  }
  func.func @transform_2(%arg0: i32) -> (i32, i32) {
    %c0_i32 = arith.constant 0 : i32
    %c0_i32_0 = arith.constant 0 : i32
    %c0_i32_1 = arith.constant 0 : i32
    return %c0_i32, %c0_i32_0 : i32, i32
  }
  func.func @transform_3(%arg0: i32) -> (i32, i32) {
    %c0_i32 = arith.constant 0 : i32
    %c0_i32_0 = arith.constant 0 : i32
    %c0_i32_1 = arith.constant 0 : i32
    return %c0_i32, %c0_i32_0 : i32, i32
  }
  func.func @transform_4(%arg0: i32) -> (i32, i32) {
    %c0_i32 = arith.constant 0 : i32
    %c0_i32_0 = arith.constant 0 : i32
    %c0_i32_1 = arith.constant 0 : i32
    return %c0_i32, %c0_i32_0 : i32, i32
  }
  func.func @transform_5(%arg0: i32) -> (i32, i32) {
    %c0_i32 = arith.constant 0 : i32
    %c0_i32_0 = arith.constant 0 : i32
    %c0_i32_1 = arith.constant 0 : i32
    return %c0_i32, %c0_i32_0 : i32, i32
  }
  func.func @transform_6(%arg0: i32) -> (i32, i32) {
    %c0_i32 = arith.constant 0 : i32
    %c0_i32_0 = arith.constant 0 : i32
    return %arg0, %c0_i32 : i32, i32
  }
  func.func @transform_7(%arg0: i32) -> (i32, i32) {
    %c0_i32 = arith.constant 0 : i32
    %c0_i32_0 = arith.constant 0 : i32
    return %arg0, %c0_i32 : i32, i32
  }
  func.func @transform_8(%arg0: i32) -> (i32, i32, i32) {
    %c0_i32 = arith.constant 0 : i32
    %c0_i32_0 = arith.constant 0 : i32
    %c0_i32_1 = arith.constant 0 : i32
    return %arg0, %c0_i32, %c0_i32_0 : i32, i32, i32
  }
  func.func @transform_9(%arg0: i32) -> (i32, i32, i32) {
    %c0_i32 = arith.constant 0 : i32
    %c0_i32_0 = arith.constant 0 : i32
    %c0_i32_1 = arith.constant 0 : i32
    return %arg0, %c0_i32, %c0_i32_0 : i32, i32, i32
  }
}

module attributes {stable_mosaic.version = 11 : i64} {
  func.func @_attention_kernel(%arg0: i32, %arg1: i32, %arg2: memref<8x128xf32, #tpu.memory_space<vmem>>, %arg3: memref<128x128xbf16, #tpu.memory_space<vmem>>, %arg4: memref<128x32xbf16, #tpu.memory_space<vmem>>, %arg5: memref<8x128xf32, #tpu.memory_space<vmem>>, %arg6: memref<8x32xf32, #tpu.memory_space<vmem>>, %arg7: memref<8x1xf32, #tpu.memory_space<vmem>>, %arg8: memref<8x1xf32, #tpu.memory_space<vmem>>, %arg9: memref<8x32xf32, #tpu.memory_space<vmem>>) attributes {dimension_semantics = [#tpu.dimension_semantics<arbitrary>, #tpu.dimension_semantics<arbitrary>], iteration_bounds = array<i64: 2, 1>, scalar_prefetch = 0 : i64, scratch_operands = 3 : i64, tpu.core_type = #tpu.core_type<tc>, window_params = [{pipeline_mode = #tpu.pipeline_mode<synchronous>, transform_indices = @transform_0, window_bounds = array<i64: 8, 128>}, {transform_indices = @transform_1, window_bounds = array<i64: 128, 128>}, {transform_indices = @transform_2, window_bounds = array<i64: 128, 32>}, {transform_indices = @transform_3, window_bounds = array<i64: 8, 128>}, {pipeline_mode = #tpu.pipeline_mode<synchronous>, transform_indices = @transform_4, window_bounds = array<i64: 8, 32>}]} {
    %c0_i32 = arith.constant 0 : i32
    %0 = arith.cmpi eq, %arg0, %c0_i32 : i32
    %c0_i32_0 = arith.constant 0 : i32
    %1 = arith.cmpi eq, %arg1, %c0_i32_0 : i32
    %2 = arith.andi %0, %1 : i1
    %3 = arith.extui %2 : i1 to i32
    %c0_i32_1 = arith.constant 0 : i32
    %4 = arith.cmpi ne, %3, %c0_i32_1 : i32
    scf.if %4 {
      %cst_13 = arith.constant -1.000000e+30 : f32
      %30 = vector.broadcast %cst_13 : f32 to vector<8x1xf32>
      %c0_14 = arith.constant 0 : index
      %c0_15 = arith.constant 0 : index
      %31 = vector.load %arg7[%c0_14, %c0_15] : memref<8x1xf32, #tpu.memory_space<vmem>>, vector<8x1xf32>
      tpu.vector_store %arg7[%c0_14, %c0_15], %30 {strides = array<i32>} : memref<8x1xf32, #tpu.memory_space<vmem>>, vector<8x1xf32>,
      %cst_16 = arith.constant 0.000000e+00 : f32
      %32 = vector.broadcast %cst_16 : f32 to vector<8x1xf32>
      %c0_17 = arith.constant 0 : index
      %c0_18 = arith.constant 0 : index
      %33 = vector.load %arg8[%c0_17, %c0_18] : memref<8x1xf32, #tpu.memory_space<vmem>>, vector<8x1xf32>
      tpu.vector_store %arg8[%c0_17, %c0_18], %32 {strides = array<i32>} : memref<8x1xf32, #tpu.memory_space<vmem>>, vector<8x1xf32>,
      %cst_19 = arith.constant 0.000000e+00 : f32
      %34 = vector.broadcast %cst_19 : f32 to vector<8x32xf32>
      %c0_20 = arith.constant 0 : index
      %c0_21 = arith.constant 0 : index
      %35 = vector.load %arg9[%c0_20, %c0_21] : memref<8x32xf32, #tpu.memory_space<vmem>>, vector<8x32xf32>
      tpu.vector_store %arg9[%c0_20, %c0_21], %34 {strides = array<i32>} : memref<8x32xf32, #tpu.memory_space<vmem>>, vector<8x32xf32>,
    } else {
    }
    %c0 = arith.constant 0 : index
    %c0_2 = arith.constant 0 : index
    %5 = vector.load %arg3[%c0, %c0_2] : memref<128x128xbf16, #tpu.memory_space<vmem>>, vector<128x128xbf16>
    %6 = arith.extf %5 : vector<128x128xbf16> to vector<128x128xf32>
    %c0_3 = arith.constant 0 : index
    %c0_4 = arith.constant 0 : index
    %7 = vector.load %arg2[%c0_3, %c0_4] : memref<8x128xf32, #tpu.memory_space<vmem>>, vector<8x128xf32>
    %cst = arith.constant dense<0.000000e+00> : vector<8x128xf32>
    %8 = tpu.matmul %7, %6, %cst {dimension_numbers = #tpu.dot_dimension_numbers<[1], [1], [0], [0], [0, 0, 1, 0], [], []>} : vector<8x128xf32>, vector<128x128xf32>, vector<8x128xf32> -> vector<8x128xf32>
    %cst_5 = arith.constant 0.0883883461 : f32
    %9 = vector.broadcast %cst_5 : f32 to vector<8x128xf32>
    %10 = arith.mulf %8, %9 : vector<8x128xf32>
    %c128_i32 = arith.constant 128 : i32
    %11 = arith.muli %arg1, %c128_i32 : i32
    %12 = tpu.iota {dimensions = array<i32: 1>} : vector<8x128xi32>
    %13 = vector.broadcast %11 : i32 to vector<8x128xi32>
    %14 = arith.addi %13, %12 : vector<8x128xi32>
    %c8_i32 = arith.constant 8 : i32
    %15 = vector.broadcast %c8_i32 : i32 to vector<8x128xi32>
    %16 = arith.cmpi slt, %14, %15 : vector<8x128xi32>
    %cst_6 = arith.constant -1.000000e+30 : f32
    %17 = vector.broadcast %cst_6 : f32 to vector<8x128xf32>
    %18 = arith.select %16, %10, %17 : vector<8x128xi1>, vector<8x128xf32>
    %c0_i32_7 = arith.constant 0 : i32
    %19 = arith.cmpi eq, %arg0, %c0_i32_7 : i32
    %20 = arith.extui %19 : i1 to i32
    %c0_i32_8 = arith.constant 0 : i32
    %21 = arith.cmpi ne, %20, %c0_i32_8 : i32
    scf.if %21 {
      %c0_13 = arith.constant 0 : index
      %c0_14 = arith.constant 0 : index
      %30 = vector.load %arg7[%c0_13, %c0_14] : memref<8x1xf32, #tpu.memory_space<vmem>>, vector<8x1xf32>
      %cst_15 = arith.constant dense<0xFF800000> : vector<8xf32>
      %31 = vector.multi_reduction <maximumf>, %18, %cst_15 [1] : vector<8x128xf32> to vector<8xf32>
      %32 = vector.shape_cast %31 : vector<8xf32> to vector<8x1xf32>
      %33 = arith.maximumf %30, %32 : vector<8x1xf32>
      %c0_16 = arith.constant 0 : index
      %c0_17 = arith.constant 0 : index
      %34 = vector.load %arg8[%c0_16, %c0_17] : memref<8x1xf32, #tpu.memory_space<vmem>>, vector<8x1xf32>
      %c0_18 = arith.constant 0 : index
      %c0_19 = arith.constant 0 : index
      %35 = vector.load %arg7[%c0_18, %c0_19] : memref<8x1xf32, #tpu.memory_space<vmem>>, vector<8x1xf32>
      %36 = arith.subf %35, %33 : vector<8x1xf32>
      %37 = math.exp %36 : vector<8x1xf32>
      %38 = arith.mulf %34, %37 : vector<8x1xf32>
      %39 = vector.broadcast %33 : vector<8x1xf32> to vector<8x128xf32>
      %40 = arith.subf %18, %39 : vector<8x128xf32>
      %41 = math.exp %40 : vector<8x128xf32>
      %cst_20 = arith.constant dense<0.000000e+00> : vector<8xf32>
      %42 = vector.multi_reduction <add>, %41, %cst_20 [1] : vector<8x128xf32> to vector<8xf32>
      %43 = vector.shape_cast %42 : vector<8xf32> to vector<8x1xf32>
      %44 = arith.addf %38, %43 : vector<8x1xf32>
      %c0_21 = arith.constant 0 : index
      %c0_22 = arith.constant 0 : index
      %45 = vector.load %arg8[%c0_21, %c0_22] : memref<8x1xf32, #tpu.memory_space<vmem>>, vector<8x1xf32>
      tpu.vector_store %arg8[%c0_21, %c0_22], %44 {strides = array<i32>} : memref<8x1xf32, #tpu.memory_space<vmem>>, vector<8x1xf32>,
      %c0_23 = arith.constant 0 : index
      %c0_24 = arith.constant 0 : index
      %46 = vector.load %arg7[%c0_23, %c0_24] : memref<8x1xf32, #tpu.memory_space<vmem>>, vector<8x1xf32>
      tpu.vector_store %arg7[%c0_23, %c0_24], %33 {strides = array<i32>} : memref<8x1xf32, #tpu.memory_space<vmem>>, vector<8x1xf32>,
    } else {
    }
    %c1_i32 = arith.constant 1 : i32
    %22 = arith.cmpi eq, %arg0, %c1_i32 : i32
    %23 = arith.extui %22 : i1 to i32
    %c0_i32_9 = arith.constant 0 : i32
    %24 = arith.cmpi ne, %23, %c0_i32_9 : i32
    scf.if %24 {
      %c0_13 = arith.constant 0 : index
      %c0_14 = arith.constant 0 : index
      %30 = vector.load %arg7[%c0_13, %c0_14] : memref<8x1xf32, #tpu.memory_space<vmem>>, vector<8x1xf32>
      %31 = vector.broadcast %30 : vector<8x1xf32> to vector<8x128xf32>
      %32 = arith.subf %18, %31 : vector<8x128xf32>
      %33 = math.exp %32 : vector<8x128xf32>
      %c0_15 = arith.constant 0 : index
      %c0_16 = arith.constant 0 : index
      %34 = vector.load %arg8[%c0_15, %c0_16] : memref<8x1xf32, #tpu.memory_space<vmem>>, vector<8x1xf32>
      %35 = vector.broadcast %34 : vector<8x1xf32> to vector<8x128xf32>
      %36 = arith.divf %33, %35 : vector<8x128xf32>
      %c0_17 = arith.constant 0 : index
      %c0_18 = arith.constant 0 : index
      %37 = vector.load %arg5[%c0_17, %c0_18] : memref<8x128xf32, #tpu.memory_space<vmem>>, vector<8x128xf32>
      tpu.vector_store %arg5[%c0_17, %c0_18], %36 {strides = array<i32>} : memref<8x128xf32, #tpu.memory_space<vmem>>, vector<8x128xf32>,
      %c0_19 = arith.constant 0 : index
      %c0_20 = arith.constant 0 : index
      %38 = vector.load %arg9[%c0_19, %c0_20] : memref<8x32xf32, #tpu.memory_space<vmem>>, vector<8x32xf32>
      %39 = arith.truncf %36 : vector<8x128xf32> to vector<8x128xbf16>
      %c0_21 = arith.constant 0 : index
      %c0_22 = arith.constant 0 : index
      %40 = vector.load %arg4[%c0_21, %c0_22] : memref<128x32xbf16, #tpu.memory_space<vmem>>, vector<128x32xbf16>
      %cst_23 = arith.constant dense<0.000000e+00> : vector<8x32xf32>
      %41 = tpu.matmul %39, %40, %cst_23 {dimension_numbers = #tpu.dot_dimension_numbers<[1], [0], [0], [1], [0, 0, 1, 1], [], []>} : vector<8x128xbf16>, vector<128x32xbf16>, vector<8x32xf32> -> vector<8x32xf32>
      %42 = arith.addf %38, %41 : vector<8x32xf32>
      %c0_24 = arith.constant 0 : index
      %c0_25 = arith.constant 0 : index
      %43 = vector.load %arg9[%c0_24, %c0_25] : memref<8x32xf32, #tpu.memory_space<vmem>>, vector<8x32xf32>
      tpu.vector_store %arg9[%c0_24, %c0_25], %42 {strides = array<i32>} : memref<8x32xf32, #tpu.memory_space<vmem>>, vector<8x32xf32>,
    } else {
    }
    %c1_i32_10 = arith.constant 1 : i32
    %25 = arith.cmpi eq, %arg0, %c1_i32_10 : i32
    %c0_i32_11 = arith.constant 0 : i32
    %26 = arith.cmpi eq, %arg1, %c0_i32_11 : i32
    %27 = arith.andi %25, %26 : i1
    %28 = arith.extui %27 : i1 to i32
    %c0_i32_12 = arith.constant 0 : i32
    %29 = arith.cmpi ne, %28, %c0_i32_12 : i32
    scf.if %29 {
      %c0_13 = arith.constant 0 : index
      %c0_14 = arith.constant 0 : index
      %30 = vector.load %arg9[%c0_13, %c0_14] : memref<8x32xf32, #tpu.memory_space<vmem>>, vector<8x32xf32>
      %c0_15 = arith.constant 0 : index
      %c0_16 = arith.constant 0 : index
      %31 = vector.load %arg6[%c0_15, %c0_16] : memref<8x32xf32, #tpu.memory_space<vmem>>, vector<8x32xf32>
      tpu.vector_store %arg6[%c0_15, %c0_16], %30 {strides = array<i32>} : memref<8x32xf32, #tpu.memory_space<vmem>>, vector<8x32xf32>,
    } else {
    }
    return
  }
  func.func @transform_0(%arg0: i32, %arg1: i32) -> (i32, i32) {
    %c0_i32 = arith.constant 0 : i32
    %c0_i32_0 = arith.constant 0 : i32
    %c0_i32_1 = arith.constant 0 : i32
    return %c0_i32, %c0_i32_0 : i32, i32
  }
  func.func @transform_1(%arg0: i32, %arg1: i32) -> (i32, i32) {
    %c0_i32 = arith.constant 0 : i32
    %c0_i32_0 = arith.constant 0 : i32
    return %arg1, %c0_i32 : i32, i32
  }
  func.func @transform_2(%arg0: i32, %arg1: i32) -> (i32, i32) {
    %c1_i32 = arith.constant 1 : i32
    %0 = arith.cmpi eq, %arg0, %c1_i32 : i32
    %c0_i32 = arith.constant 0 : i32
    %1 = arith.select %0, %arg1, %c0_i32 : i32
    %c0_i32_0 = arith.constant 0 : i32
    %c0_i32_1 = arith.constant 0 : i32
    return %1, %c0_i32_0 : i32, i32
  }
  func.func @transform_3(%arg0: i32, %arg1: i32) -> (i32, i32) {
    %c1_i32 = arith.constant 1 : i32
    %0 = arith.cmpi eq, %arg0, %c1_i32 : i32
    %c0_i32 = arith.constant 0 : i32
    %1 = arith.select %0, %arg1, %c0_i32 : i32
    %c0_i32_0 = arith.constant 0 : i32
    %c0_i32_1 = arith.constant 0 : i32
    return %c0_i32_0, %1 : i32, i32
  }
  func.func @transform_4(%arg0: i32, %arg1: i32) -> (i32, i32) {
    %c0_i32 = arith.constant 0 : i32
    %c0_i32_0 = arith.constant 0 : i32
    %c0_i32_1 = arith.constant 0 : i32
    return %c0_i32, %c0_i32_0 : i32, i32
  }
}

</mosaic_0001>

<bundles_post_ra>
// kernel: bclassifier_forward.3
= control target key start
LH: loop header
LB: loop body
LE: loop exit
PB: predicated region body
PF: predicated region fallthrough
CT: control target
= control target key end

     0   :  { %s908_s15 = smov 0   ;;  %s910_s16 = smov 0   ;;  %s1007_s0 = inlined_call_operand.vmem [shape: f32[8,128], index: 0, kind: input, shape index: {}]   ;;  %s1008_s1 = inlined_call_operand.vmem [shape: bf16[128,128], index: 1, kind: input, shape index: {}]   ;;  %s1009_s2 = inlined_call_operand.vmem [shape: bf16[128,32], index: 2, kind: input, shape index: {}]   ;;  %s1010_s3 = inlined_call_operand.vmem [shape: f32[8,128], index: 3, kind: output, shape index: {0}]   ;;  %s1011_s4 = inlined_call_operand.vmem [shape: f32[8,32], index: 4, kind: output, shape index: {1}]  }
   0x1   :  { %s912_s17 = smov 0  }
   0x2 LB: > { %s27_s18 = sadd.s32 1, %s868_s16  ;;  %p636_p0 = scmp.ge.s32.totalorder %s872_s17, 1  ;;  %s872_s17 = sphi %s912_s17, %s15_s17   ;;  %s868_s16 = sphi %s910_s16, %s1013_s16   ;;  %s864_s15 = sphi %s908_s15, %s1012_s15  }
   0x3   : > { %p29_p1 = scmp.ge.s32.totalorder %s27_s18, 2  ;;  %p196_p2 = scmp.lt.s32.totalorder %s872_s17, 3 }
   0x5   : > { %s1015_s18 = smov (%p29_p1, %s27_s18), 0  ;;  %p197_p3 = pnand %p636_p0, %p196_p2 }
   0x6   : > { %p255_p4 = scmp.eq.s32.totalorder (!%p197_p3), %s864_s15, 0 }
   0x7   : > { %200 = sbr.rel (%p197_p3) target bundleno = 1107 (0x453), region = 32 }
   0xe   : > { %260 = sbr.rel (!%p255_p4) target bundleno = 21 (0x15), region = 36  ;;  %vm261_vm0 = vcmask (%p255_p4), 7168   ;;  %vm264_vm1 = vcmask (%p255_p4), 261120   ;;  %v874_v0 = vmov (%p255_p4), -1e+30   ;;  %v875_v1 = vmov (%p255_p4), 0.0  }
   0xf   : > { %262 = vst.msk [vmem:[#allocation2] sm:$0xff] (%p255_p4), %vm261_vm0, %v874_v0  ;;  %263 = vst.msk [vmem:[#allocation3] sm:$0xff] (%p255_p4), %vm261_vm0, %v875_v1 }
  0x10   : > { %265 = vst.msk [vmem:[#allocation4] sm:$0xff] (%p255_p4), %vm264_vm1, %v875_v1 }
  0x15 PF: > { %v656_v2 = vld [vmem:[%s1008_s1] sm:$0xff]   ;;  %v876_v3 = vmov 0.0|0.0   ;;  %vm877_vm2 = vmmov 0   ;;  %v878_v4 = vmov 0.0   ;;  %v687_v5 = vld [vmem:[%s1008_s1 + $0x8] sm:$0xff]   ;;  %v688_v6 = vld [vmem:[%s1008_s1 + $0x10] sm:$0xff]   ;;  %v371_v13 = vlaneseq }
  0x16   : > { %775 = vmatprep.subr.bf16.mxu0 %v876_v3  ;;  %752 = vmatprep.mubr.msk.f32.mxu0 %vm877_vm2, %v878_v4  ;;  %v689_v7 = vld [vmem:[%s1008_s1 + $0x18] sm:$0xff]   ;;  %v690_v8 = vld [vmem:[%s1008_s1 + $0x20] sm:$0xff]   ;;  %v691_v9 = vld [vmem:[%s1008_s1 + $0x28] sm:$0xff]   ;;  %p638_p5 = scmp.ne.s32.totalorder %s864_s15, 0 }
  0x17   : > { %777 = vmatpush3.bf16.xpose.msra.mxu0 %v656_v2  ;;  %v692_v10 = vld [vmem:[%s1008_s1 + $0x30] sm:$0xff]   ;;  %v693_v11 = vld [vmem:[%s1008_s1 + $0x38] sm:$0xff]   ;;  %v298_v12 = vld [vmem:[%s1007_s0] sm:$0xff]  ;;  %v372_v14 = vand.u32 127, %v371_v13  ;;  %v879_v19 = vmov (!%p638_p5), 0   ;;  %vm400_vm4 = vcmask (!%p638_p5), 7168  }
  0x18   : > { %778 = vmatprep.subr.bf16.mxu0 %v876_v3  ;;  %832 = vset.pattern.permute.xlu0 (!%p638_p5), %v879_v19  ;;  %v380_v20 = vld [vmem:[#allocation2] sm:$0xff] (!%p638_p5)  ;;  %v384_v30 = vld [vmem:[#allocation3] sm:$0xff] (!%p638_p5) }
  0x19   : > { %vm375_vm3 = vcmp.lt.s32.totalorder %v372_v14, 8 }
  0x1f   : > { %780 = vmatpush3.bf16.xpose.msra.mxu0 %v687_v5 }
  0x20   : > { %781 = vmatprep.subr.bf16.mxu0 %v876_v3 }
  0x27   : > { %783 = vmatpush3.bf16.xpose.msra.mxu0 %v688_v6 }
  0x28   : > { %784 = vmatprep.subr.bf16.mxu0 %v876_v3 }
  0x2f   : > { %786 = vmatpush3.bf16.xpose.msra.mxu0 %v689_v7 }
  0x30   : > { %787 = vmatprep.subr.bf16.mxu0 %v876_v3 }
  0x37   : > { %789 = vmatpush3.bf16.xpose.msra.mxu0 %v690_v8 }
  0x38   : > { %790 = vmatprep.subr.bf16.mxu0 %v876_v3 }
  0x3f   : > { %792 = vmatpush3.bf16.xpose.msra.mxu0 %v691_v9 }
  0x40   : > { %793 = vmatprep.subr.bf16.mxu0 %v876_v3 }
  0x47   : > { %795 = vmatpush3.bf16.xpose.msra.mxu0 %v692_v10 }
  0x48   : > { %796 = vmatprep.subr.bf16.mxu0 %v876_v3 }
  0x4f   : > { %798 = vmatpush3.bf16.xpose.msra.mxu0 %v693_v11 }
  0x56   : > { %753 = vmatmul.mubr.f32.vlgmr.msra.gmra.mrb[0].mxu0 %v298_v12 }
 0x126   : > { %379 = sbr.rel (%p638_p5) target bundleno = 733 (0x2dd), region = 40 }
 0x129   : > { %v365_v15 = vpop.f32.mrb[0].mxu0 }
 0x12a   : > { %v369_v16 = vmul.f32 0.088388346, %v365_v15  ;;  %v754_v17 = vpop.f32.mrb[1].mxu0 }
 0x12c   : > { %v956_v18 = vsel %vm375_vm3, %v369_v16, -1e+30 }
 0x12d   : > { %381 = vmax.xlane.f32.xlu0 %v956_v18 }
 0x1ba   : > { %v382_v21 = vpop.xlane.xlu0 %381 }
 0x1bb   : > { %v383_v22 = vmax.f32 %v380_v20, %v382_v21 }
 0x1bd   : > { %v385_v23 = vsub.f32 %v380_v20, %v383_v22  ;;  %402 = vst.msk [vmem:[#allocation2] sm:$0xff] %vm400_vm4, %v383_v22  ;;  %391 = vperm.xlu0 %832, %v383_v22  }
 0x1bf   : > { %v386_v28 = vmul.f32 1.442695, %v385_v23 }
 0x23c   : > { %v392_v24 = vpop.permute.xlu0 %391 }
 0x23d   : > { %v394_v25 = vsub.f32 %v956_v18, %v392_v24 }
 0x23f   : > { %v395_v26 = vmul.f32 1.442695, %v394_v25 }
 0x241   : > { %833 = vpow2.f32 %v395_v26 }
 0x242   : > { %835 = vpow2.f32 %v386_v28 }
 0x24b   : > { %v834_v27 = vpop.eup %833 }
 0x24c   : > { %397 = vadd.xlane.f32.xlu1 %v834_v27  ;;  %v836_v29 = vpop.eup %835 }
 0x24d   : > { %v388_v31 = vmul.f32 %v836_v29, %v384_v30 }
 0x2d9   : > { %v398_v32 = vpop.xlane.xlu1 %397 }
 0x2da   : > { %v399_v33 = vadd.f32 %v398_v32, %v388_v31 }
 0x2dc   : > { %401 = vst.msk [vmem:[#allocation3] sm:$0xff] %vm400_vm4, %v399_v33 }
 0x2dd PF: > { %p403_p6 = scmp.eq.s32.totalorder %s864_s15, 1  ;;  %p639_p7 = scmp.ne.s32.totalorder %s864_s15, 1 }
 0x2de   : > { %v407_v34 = vld [vmem:[#allocation2] sm:$0xff] (!%p639_p7)  ;;  %v880_v35 = vmov (!%p639_p7), 0   ;;  %v881_v36 = vmov (!%p639_p7), 0.0   ;;  %v839_v39 = vld [vmem:[%s1009_s2 + $0x8] sm:$0xff] (!%p639_p7)   ;;  %v840_v40 = vld [vmem:[%s1009_s2 + $0x10] sm:$0xff] (!%p639_p7)   ;;  %vm882_vm5 = vmmov (!%p639_p7), 0  }
 0x2df   : > { %406 = sbr.rel (%p639_p7) target bundleno = 1099 (0x44b), region = 44  ;;  %837 = vset.pattern.permute.xlu0 (!%p639_p7), %v880_v35  ;;  %755 = vmatprep.subr.bf16.mxu0 (!%p639_p7), %v881_v36  ;;  %v838_v37 = vld [vmem:[%s1009_s2] sm:$0xff] (!%p639_p7)   ;;  %v841_v41 = vld [vmem:[%s1009_s2 + $0x18] sm:$0xff] (!%p639_p7)   ;;  %v843_v43 = vld [vmem:[%s1009_s2 + $0x28] sm:$0xff] (!%p639_p7)   ;;  %vm532_vm6 = vcmask (!%p639_p7), 261120  }
 0x2e0   : > { %410 = vperm.xlu0 (!%p639_p7), %837, %v407_v34   ;;  %756 = vmatpush3.bf16.msra.mxu0 (!%p639_p7), %v838_v37  ;;  %v842_v42 = vld [vmem:[%s1009_s2 + $0x20] sm:$0xff] (!%p639_p7)   ;;  %v844_v44 = vld [vmem:[%s1009_s2 + $0x30] sm:$0xff] (!%p639_p7)   ;;  %v845_v45 = vld [vmem:[%s1009_s2 + $0x38] sm:$0xff] (!%p639_p7)  }
 0x2e1   : > { %757 = vmatprep.subr.bf16.mxu0 (!%p639_p7), %v881_v36  ;;  %771 = vmatprep.mubr.msk.bf16.mxu0 (!%p639_p7), %vm882_vm5, %v881_v36  ;;  %v425_v54 = vld [vmem:[#allocation4] sm:$0xff] (!%p639_p7) }
 0x2e3   : > { %v416_v38 = vld [vmem:[#allocation3] sm:$0xff] (!%p639_p7) }
 0x2e4   : > { %419 = vperm.xlu0 (!%p639_p7), %837, %v416_v38   ;;  %758 = vmatpush3.bf16.msra.mxu0 (!%p639_p7), %v839_v39 }
 0x2e5   : > { %759 = vmatprep.subr.bf16.mxu0 (!%p639_p7), %v881_v36 }
 0x2e8   : > { %760 = vmatpush3.bf16.msra.mxu0 %v840_v40 }
 0x2e9   : > { %761 = vmatprep.subr.bf16.mxu0 %v881_v36 }
 0x2ec   : > { %762 = vmatpush3.bf16.msra.mxu0 %v841_v41 }
 0x2ed   : > { %763 = vmatprep.subr.bf16.mxu0 %v881_v36 }
 0x2f0   : > { %764 = vmatpush3.bf16.msra.mxu0 %v842_v42 }
 0x2f1   : > { %765 = vmatprep.subr.bf16.mxu0 %v881_v36 }
 0x2f4   : > { %766 = vmatpush3.bf16.msra.mxu0 %v843_v43 }
 0x2f5   : > { %767 = vmatprep.subr.bf16.mxu0 %v881_v36 }
 0x2f8   : > { %768 = vmatpush3.bf16.msra.mxu0 %v844_v44 }
 0x2f9   : > { %769 = vmatprep.subr.bf16.mxu0 %v881_v36 }
 0x2fc   : > { %770 = vmatpush3.bf16.msra.mxu0 %v845_v45 }
 0x35f   : > { %v411_v46 = vpop.permute.xlu0 %410 }
 0x360   : > { %v413_v47 = vsub.f32 %v956_v18, %v411_v46 }
 0x362   : > { %v414_v48 = vmul.f32 1.442695, %v413_v47 }
 0x363   : > { %v420_v49 = vpop.permute.xlu0 %419 }
 0x364   : > { %846 = vpow2.f32 %v414_v48 }
 0x365   : > { %848 = vrcp.f32 %v420_v49 }
 0x36e   : > { %v847_v50 = vpop.eup %846 }
 0x36f   : > { %v849_v51 = vpop.eup %848 }
 0x370   : > { %v423_v52 = vmul.f32 %v849_v51, %v847_v50 }
 0x372   : > { %424 = vst [vmem:[%s1010_s3] sm:$0xff] %v423_v52  ;;  %v426_v53 = vpack.c.bf16 %v423_v52, %v423_v52 }
 0x374   : > { %772 = vmatmul.mubr.bf16.vlgmr.msra.gmra.mrb[0].mxu0 %v426_v53 }
 0x447   : > { %v525_v55 = vpop.f32.mrb[0].mxu0 }
 0x448   : > { %v531_v56 = vadd.f32 %v525_v55, %v425_v54  ;;  %v773_v57 = vpop.f32.mrb[1].mxu0 }
 0x449   : > { %v528_v58 = vpop.f32.mrb[2].mxu0 }
 0x44a   : > { %533 = vst.msk [vmem:[#allocation4] sm:$0xff] %vm532_vm6, %v531_v56  ;;  %v774_v59 = vpop.f32.mrb[3].mxu0 }
 0x44b PF: > { %537 = sbr.rel (!%p403_p6) target bundleno = 1107 (0x453), region = 48  ;;  %vm539_vm7 = vcmask (%p403_p6), 261120  }
 0x451   : > { %v538_v60 = vld [vmem:[#allocation4] sm:$0xff] (%p403_p6) }
 0x452   : > { %540 = vst.msk [vmem:[%s1011_s4] sm:$0xff] %vm539_vm7, %v538_v60 }
 0x453 PF: > { %s15_s17 = sadd.s32 1, %s872_s17   ;;  %s1012_s15 = smov %s868_s16 }
 0x454   : > { %p12_p8 = scmp.ge.s32.totalorder %s15_s17, 4   ;;  %s1013_s16 = smov %s1015_s18 }
 0x456   :  { %14 = sbr.rel (!%p12_p8) target bundleno = 2 (0x2), region = 89 }

// kernel: bclassifier_forward.2
= control target key start
LH: loop header
LB: loop body
LE: loop exit
PB: predicated region body
PF: predicated region fallthrough
CT: control target
= control target key end

     0   :  { %15 = vsyncpa [#allocation3], 0  ;;  %s1379_s0 = inlined_call_operand.vmem [shape: f32[8,32], index: 0, kind: input, shape index: {}]   ;;  %s1380_s1 = inlined_call_operand.vmem [shape: f32[8,8], index: 1, kind: input, shape index: {}]   ;;  %s1381_s2 = inlined_call_operand.vmem [shape: bf16[32,128], index: 2, kind: input, shape index: {}]   ;;  %s1382_s3 = inlined_call_operand.vmem [shape: f32[1,128], index: 3, kind: input, shape index: {}]   ;;  %s1383_s4 = inlined_call_operand.hbm [shape: bf16[128,128], index: 4, kind: input, shape index: {}]   ;;  %s1384_s5 = inlined_call_operand.vmem [shape: f32[1,128], index: 5, kind: input, shape index: {}]   ;;  %s1385_s6 = inlined_call_operand.vmem [shape: bf16[128,128], index: 6, kind: output, shape index: {0}]   ;;  %s1386_s7 = inlined_call_operand.vmem [shape: bf16[128,32], index: 7, kind: output, shape index: {1}]   ;;  %s1387_s8 = inlined_call_operand.vmem [shape: f32[1,8,128], index: 8, kind: output, shape index: {2}]   ;;  %s1388_s9 = inlined_call_operand.hbm [shape: f32[1,8,1], index: 9, kind: output, shape index: {3}]  }
   0x1   :  { %16 = vsyncpa [#allocation4], 0  ;;  %s1131_s30 = smov [#allocation2]   ;;  %s1083_s13 = scalar_lea.hbm %s1383_s4, 1024 }
   0x2   :  { %s30_s10 = sshll.u32 %s1131_s30, 4  ;;  %p1084_p0 = scmp.ne.s32.totalorder %s1383_s4, %s1083_s13  ;;  %s31_s10 = int_to_ptr.vmem [resolvable:$true] %s30_s10 }
   0x3   :  { %p1087_p1 = scmp.lt.u32.totalorder %s1083_s13, %s1383_s4 }
   0x5   :  { %p1089_p2 = pnand %p1087_p1, %p1084_p0 }
   0x7   :  { %1092 = shalt.err (!%p1089_p2)
}
   0x8   :  { %s1093_s18 = scalar_lea.vmem %s31_s10, 1024  ;;  %p1098_p4 = scmp.lt.s32.totalorder %s31_s10, %s31_s10 }
   0x9   :  { %p1094_p3 = scmp.ne.s32.totalorder %s31_s10, %s1093_s18  ;;  %p1099_p5 = scmp.lt.s32.totalorder %s1093_s18, %s1093_s18 }
   0xb   :  { %p1100_p6 = por %p1099_p5, %p1098_p4 }
   0xd   :  { %p1101_p7 = pnand %p1100_p6, %p1094_p3 }
   0xf   :  { %1104 = shalt.err (!%p1101_p7)
}
  0x10   :  { %s1132_s19 = smov 64   ;;  %s1133_s20 = smov 4  }
  0x11   :  { %36 = dma.hbm_to_vmem [thread:$0]  %s1383_s4, 1024, %s31_s10, [#allocation3], %s1132_s19, %s1132_s19, %s1133_s20  }
  0x12   :  { %1127 = dma.done.wait [#allocation3], 1024  }
  0x13   :  { %1128 = vsyncadd [#allocation3], 4294966272  ;;  %v641_v0 = vlaneseq  ;;  %vm190_vm0 = vcmask 257024   ;;  %v1134_v2 = vmov 0.0|0.0   ;;  %v640_v5 = vld [vmem:[%s1380_s1] sm:$0xff]  ;;  %v1042_v8 = vld [vmem:[%s1381_s2 + $0x8] sm:$0xff]  }
  0x14   :  { %v769_v3 = vcombine.low %v1134_v2, %v1134_v2  ;;  %v770_v4 = vcombine.high %v1134_v2, %v1134_v2  ;;  %192 = vst.msk [vmem:[%s1386_s7 + $0x4] sm:$0xf] %vm190_vm0, %v1134_v2  ;;  %v1041_v7 = vld [vmem:[%s1381_s2] sm:$0xff]   ;;  %vm230_vm2 = vcmask 261120   ;;  %v1135_v10 = vmov 0.0   ;;  %v1044_v14 = vld [vmem:[#allocation2 + $0x8] sm:$0xff]  }
  0x15   :  { %v1201_v1 = vand.u32 127, %v641_v0  ;;  %v44_v9 = vld [vmem:[%s1379_s0] sm:$0xff]  ;;  %922 = vmatprep.subr.bf16.mxu0 %v1041_v7  ;;  %v1045_v15 = vld [vmem:[#allocation2 + $0x10] sm:$0xff]   ;;  %v1046_v16 = vld [vmem:[#allocation2 + $0x18] sm:$0xff]   ;;  %vm738_vm3 = vcmask 7168   ;;  %vm1136_vm6 = vmmov 0  }
  0x16   :  { %193 = vst.msk [vmem:[%s1386_s7 + $0x8] sm:$0xf] %vm190_vm0, %v769_v3  ;;  %194 = vst.msk [vmem:[%s1386_s7 + $0xc] sm:$0xf] %vm190_vm0, %v770_v4  ;;  %v126_v11 = vpack.c.bf16 %v1135_v10, %v44_v9  ;;  %v814_v12 = vpack.c.bf16 %v44_v9, %v44_v9  ;;  %923 = vmatpush3.bf16.msra.mxu0 %v1041_v7  ;;  %v1043_v13 = vld [vmem:[#allocation2] sm:$0xff]   ;;  %v1048_v18 = vld [vmem:[#allocation2 + $0x28] sm:$0xff]  }
  0x17   :  { %195 = vst.msk [vmem:[%s1386_s7 + $0x10] sm:$0xf] %vm190_vm0, %v769_v3  ;;  %196 = vst.msk [vmem:[%s1386_s7 + $0x14] sm:$0xf] %vm190_vm0, %v770_v4  ;;  %vm644_vm1 = vcmp.lt.s32.totalorder %v1201_v1, 8  ;;  %924 = vmatprep.subr.bf16.mxu0 %v1042_v8  ;;  %942 = vmatprep.subr.bf16.mxu1 %v1043_v13  ;;  %v1047_v17 = vld [vmem:[#allocation2 + $0x20] sm:$0xff]  }
  0x18   :  { %197 = vst.msk [vmem:[%s1386_s7 + $0x18] sm:$0xf] %vm190_vm0, %v769_v3  ;;  %198 = vst.msk [vmem:[%s1386_s7 + $0x1c] sm:$0xf] %vm190_vm0, %v770_v4  ;;  %v645_v6 = vsel %vm644_vm1, %v640_v5, -1e+30  ;;  %926 = vmatprep.mubr.msk.bf16.mxu0 %vm230_vm2, %v126_v11  ;;  %943 = vmatpush3.bf16.msra.mxu1 %v1043_v13 }
  0x19   :  { %199 = vst.msk [vmem:[%s1386_s7 + $0x20] sm:$0xf] %vm190_vm0, %v769_v3  ;;  %200 = vst.msk [vmem:[%s1386_s7 + $0x24] sm:$0xf] %vm190_vm0, %v770_v4  ;;  %646 = vmax.xlane.f32.xlu0 %v645_v6  ;;  %944 = vmatprep.subr.bf16.mxu1 %v1044_v14  ;;  %v1049_v19 = vld [vmem:[#allocation2 + $0x30] sm:$0xff]   ;;  %v1050_v20 = vld [vmem:[#allocation2 + $0x38] sm:$0xff]  }
  0x1a   :  { %201 = vst.msk [vmem:[%s1386_s7 + $0x28] sm:$0xf] %vm190_vm0, %v769_v3  ;;  %202 = vst.msk [vmem:[%s1386_s7 + $0x2c] sm:$0xf] %vm190_vm0, %v770_v4  ;;  %925 = vmatpush3.bf16.msra.mxu0 %v1042_v8  ;;  %v783_v25 = vld [vmem:[%s1382_s3] ss:$0 sm:$0xff] }
  0x1b   :  { %203 = vst.msk [vmem:[%s1386_s7 + $0x30] sm:$0xf] %vm190_vm0, %v769_v3  ;;  %204 = vst.msk [vmem:[%s1386_s7 + $0x34] sm:$0xf] %vm190_vm0, %v770_v4  ;;  %1009 = vmatprep.subr.bf16.mxu0 %v1134_v2  ;;  %s1138_s11 = smov [#allocation5]  }
  0x1c   :  { %205 = vst.msk [vmem:[%s1386_s7 + $0x38] sm:$0xf] %vm190_vm0, %v769_v3  ;;  %206 = vst.msk [vmem:[%s1386_s7 + $0x3c] sm:$0xf] %vm190_vm0, %v770_v4  ;;  %945 = vmatpush3.bf16.msra.mxu1 %v1044_v14  ;;  %s752_s12 = sshll.u32 %s1138_s11, 4  ;;  %s753_s12 = int_to_ptr.vmem [resolvable:$true] %s752_s12 }
  0x1d   :  { %191 = vst.msk [vmem:[%s1386_s7] sm:$0xf] %vm190_vm0, %v814_v12  ;;  %927 = vmatmul.mubr.bf16.vlgmr.msra.gmra.mrb[0].mxu0 %v1134_v2  ;;  %946 = vmatprep.subr.bf16.mxu1 %v1045_v15  ;;  %s1105_s13 = scalar_lea.vmem %s753_s12, 128  ;;  %p1110_p9 = scmp.lt.s32.totalorder %s753_s12, %s753_s12 }
  0x1e   :  { %930 = vmatprep.mubr.bf16.mxu0 %v1134_v2  ;;  %p1106_p8 = scmp.ne.s32.totalorder %s753_s12, %s1105_s13  ;;  %p1111_p10 = scmp.lt.s32.totalorder %s1105_s13, %s1105_s13 }
  0x20   :  { %947 = vmatpush3.bf16.msra.mxu1 %v1045_v15  ;;  %p1112_p11 = por %p1111_p10, %p1110_p9 }
  0x21   :  { %948 = vmatprep.subr.bf16.mxu1 %v1046_v16 }
  0x22   :  { %p1113_p12 = pnand %p1112_p11, %p1106_p8 }
  0x24   :  { %949 = vmatpush3.bf16.msra.mxu1 %v1046_v16 }
  0x25   :  { %931 = vmatmul.mubr.bf16.gmra.mrb[4].mxu0 %v1134_v2  ;;  %950 = vmatprep.subr.bf16.mxu1 %v1047_v17 }
  0x26   :  { %934 = vmatprep.mubr.bf16.mxu0 %v1134_v2 }
  0x28   :  { %951 = vmatpush3.bf16.msra.mxu1 %v1047_v17 }
  0x29   :  { %952 = vmatprep.subr.bf16.mxu1 %v1048_v18 }
  0x2c   :  { %953 = vmatpush3.bf16.msra.mxu1 %v1048_v18 }
  0x2d   :  { %935 = vmatmul.mubr.bf16.gmra.mrb[8].mxu0 %v1134_v2  ;;  %954 = vmatprep.subr.bf16.mxu1 %v1049_v19 }
  0x2e   :  { %938 = vmatprep.mubr.bf16.mxu0 %v1134_v2 }
  0x30   :  { %955 = vmatpush3.bf16.msra.mxu1 %v1049_v19 }
  0x31   :  { %956 = vmatprep.subr.bf16.mxu1 %v1050_v20 }
  0x34   :  { %957 = vmatpush3.bf16.msra.mxu1 %v1050_v20 }
  0x35   :  { %939 = vmatmul.mubr.bf16.gmra.mrb[12].mxu0 %v1134_v2 }
  0x36   :  { %1006 = vmatprep.mubr.msk.f32.mxu0 %vm1136_vm6, %v1135_v10 }
  0xa6   :  { %v647_v21 = vpop.xlane.xlu0 %646 }
  0xa7   :  { %vm648_vm4 = vcmp.eq.f32.partialorder %v645_v6, %v647_v21  ;;  %739 = vst.msk [vmem:[#allocation5] sm:$0xff] %vm738_vm3, %v647_v21 }
  0xa8   :  { %v1295_v22 = vsel %vm648_vm4, %v1201_v1, 128 }
  0xa9   :  { %v651_v23 = vshra.s32 %v1295_v22, 16  ;;  %v650_v21 = vand.u32 65535, %v1295_v22 }
  0xab   :  { %v1298_v24 = vcvt.s32.f32 %v651_v23 }
  0xad   :  { %654 = vmin.xlane.f32.xlu0 %v1298_v24 }
  0xf0   :  { %v928_v26 = vpop.f32.mrb[0].mxu0 }
  0xf1   :  { %v298_v27 = vadd.f32 %v928_v26, %v783_v25  ;;  %v289_v28 = vpop.f32.mrb[1].mxu0  ;;  %v652_v26 = vcvt.s32.f32 %v650_v21 }
  0xf2   :  { %v290_v29 = vadd.f32 %v783_v25, %v289_v28  ;;  %v929_v30 = vpop.f32.mrb[2].mxu0 }
  0xf3   :  { %v301_v31 = vadd.f32 %v929_v30, %v783_v25  ;;  %v292_v32 = vpop.f32.mrb[3].mxu0  ;;  %v354_v34 = vmax.f32 %v298_v27, 0.0 }
  0xf4   :  { %v293_v33 = vadd.f32 %v783_v25, %v292_v32  ;;  %v352_v36 = vmax.f32 %v290_v29, 0.0 }
  0xf5   :  { %v355_v35 = vmax.f32 %v301_v31, 0.0 }
  0xf6   :  { %v353_v37 = vmax.f32 %v293_v33, 0.0 }
  0xf7   :  { %v369_v38 = vpack.c.bf16 %v355_v35, %v354_v34 }
  0xf8   :  { %v932_v39 = vpop.f32.mrb[4].mxu0  ;;  %v368_v40 = vpack.c.bf16 %v353_v37, %v352_v36 }
  0xf9   :  { %v314_v41 = vadd.f32 %v932_v39, %v783_v25  ;;  %v305_v42 = vpop.f32.mrb[5].mxu0 }
  0xfa   :  { %v306_v43 = vadd.f32 %v783_v25, %v305_v42  ;;  %v933_v44 = vpop.f32.mrb[6].mxu0  ;;  %958 = vmatprep.mubr.bf16.mxu1 %v368_v40 }
  0xfb   :  { %v317_v45 = vadd.f32 %v933_v44, %v783_v25  ;;  %v308_v46 = vpop.f32.mrb[7].mxu0  ;;  %959 = vmatmul.mubr.bf16.vlgmr.msra.gmra.mrb[0].mxu1 %v369_v38  ;;  %v358_v48 = vmax.f32 %v314_v41, 0.0 }
  0xfc   :  { %v309_v47 = vadd.f32 %v783_v25, %v308_v46  ;;  %v356_v50 = vmax.f32 %v306_v43, 0.0 }
  0xfd   :  { %v359_v49 = vmax.f32 %v317_v45, 0.0 }
  0xfe   :  { %v357_v51 = vmax.f32 %v309_v47, 0.0 }
  0xff   :  { %v371_v52 = vpack.c.bf16 %v359_v49, %v358_v48 }
 0x100   :  { %v370_v53 = vpack.c.bf16 %v357_v51, %v356_v50  ;;  %v936_v54 = vpop.f32.mrb[8].mxu0 }
 0x101   :  { %v330_v55 = vadd.f32 %v936_v54, %v783_v25  ;;  %v321_v56 = vpop.f32.mrb[9].mxu0 }
 0x102   :  { %v322_v57 = vadd.f32 %v783_v25, %v321_v56  ;;  %v937_v58 = vpop.f32.mrb[10].mxu0  ;;  %962 = vmatprep.mubr.bf16.mxu1 %v370_v53 }
 0x103   :  { %v333_v59 = vadd.f32 %v937_v58, %v783_v25  ;;  %v324_v60 = vpop.f32.mrb[11].mxu0  ;;  %963 = vmatmul.mubr.bf16.gmra.mrb[4].mxu1 %v371_v52  ;;  %v362_v62 = vmax.f32 %v330_v55, 0.0 }
 0x104   :  { %v325_v61 = vadd.f32 %v783_v25, %v324_v60  ;;  %v360_v0 = vmax.f32 %v322_v57, 0.0 }
 0x105   :  { %v363_v63 = vmax.f32 %v333_v59, 0.0 }
 0x106   :  { %v361_v3 = vmax.f32 %v325_v61, 0.0 }
 0x107   :  { %v373_v4 = vpack.c.bf16 %v363_v63, %v362_v62 }
 0x108   :  { %v372_v5 = vpack.c.bf16 %v361_v3, %v360_v0  ;;  %v940_v6 = vpop.f32.mrb[12].mxu0 }
 0x109   :  { %v346_v7 = vadd.f32 %v940_v6, %v783_v25  ;;  %v337_v8 = vpop.f32.mrb[13].mxu0 }
 0x10a   :  { %v338_v9 = vadd.f32 %v783_v25, %v337_v8  ;;  %v941_v11 = vpop.f32.mrb[14].mxu0  ;;  %966 = vmatprep.mubr.bf16.mxu1 %v372_v5 }
 0x10b   :  { %v349_v12 = vadd.f32 %v941_v11, %v783_v25  ;;  %v340_v13 = vpop.f32.mrb[15].mxu0  ;;  %967 = vmatmul.mubr.bf16.gmra.mrb[8].mxu1 %v373_v4  ;;  %v366_v15 = vmax.f32 %v346_v7, 0.0 }
 0x10c   :  { %v341_v14 = vadd.f32 %v783_v25, %v340_v13  ;;  %v364_v17 = vmax.f32 %v338_v9, 0.0  ;;  %v1313_v25 = vld [vmem:[%s1384_s5] ss:$0 sm:$0xff] }
 0x10d   :  { %v367_v16 = vmax.f32 %v349_v12, 0.0 }
 0x10e   :  { %v365_v18 = vmax.f32 %v341_v14, 0.0 }
 0x10f   :  { %v375_v19 = vpack.c.bf16 %v367_v16, %v366_v15 }
 0x110   :  { %v374_v20 = vpack.c.bf16 %v365_v18, %v364_v17 }
 0x112   :  { %970 = vmatprep.mubr.bf16.mxu1 %v374_v20 }
 0x113   :  { %971 = vmatmul.mubr.bf16.gmra.mrb[12].mxu1 %v375_v19 }
 0x13a   :  { %v1305_v23 = vpop.xlane.xlu0 %654 }
 0x13b   :  { %vm656_vm5 = vcmp.eq.f32.partialorder %v1298_v24, %v1305_v23  ;;  %v661_v18 = vcvt.f32.s32 %v1305_v23 }
 0x13c   :  { %v657_v27 = vsel %vm656_vm5, %v652_v26, inf }
 0x13d   :  { %658 = vmin.xlane.f32.xlu1 %v657_v27  ;;  %v662_v27 = vshll.u32 %v661_v18, 16 }
 0x1ca   :  { %v659_v16 = vpop.xlane.xlu1 %658 }
 0x1cb   :  { %v660_v21 = vcvt.f32.s32 %v659_v16 }
 0x1cd   :  { %v663_v23 = vadd.s32 %v662_v27, %v660_v21 }
 0x1ce   :  { %v960_v28 = vpop.f32.mrb[0].mxu1 }
 0x1cf   :  { %v490_v29 = vadd.f32 %v960_v28, %v1313_v25  ;;  %v481_v22 = vpop.f32.mrb[1].mxu1  ;;  %vm664_vm7 = vcmp.eq.s32.totalorder %v1201_v1, %v663_v23 }
 0x1d0   :  { %v482_v30 = vadd.f32 %v1313_v25, %v481_v22  ;;  %v961_v31 = vpop.f32.mrb[2].mxu1 }
 0x1d1   :  { %1051 = vtanh.f32 %v490_v29  ;;  %v493_v24 = vadd.f32 %v961_v31, %v1313_v25  ;;  %v484_v32 = vpop.f32.mrb[3].mxu1 }
 0x1d2   :  { %1053 = vtanh.f32 %v482_v30  ;;  %v485_v33 = vadd.f32 %v1313_v25, %v484_v32 }
 0x1d3   :  { %1055 = vtanh.f32 %v493_v24 }
 0x1d4   :  { %1057 = vtanh.f32 %v485_v33 }
 0x1d6   :  { %v964_v10 = vpop.f32.mrb[4].mxu1 }
 0x1d7   :  { %v506_v34 = vadd.f32 %v964_v10, %v1313_v25  ;;  %v497_v35 = vpop.f32.mrb[5].mxu1 }
 0x1d8   :  { %v498_v36 = vadd.f32 %v1313_v25, %v497_v35  ;;  %v965_v37 = vpop.f32.mrb[6].mxu1 }
 0x1d9   :  { %1059 = vtanh.f32 %v506_v34  ;;  %v509_v38 = vadd.f32 %v965_v37, %v1313_v25  ;;  %v500_v39 = vpop.f32.mrb[7].mxu1 }
 0x1da   :  { %1061 = vtanh.f32 %v498_v36  ;;  %v501_v40 = vadd.f32 %v1313_v25, %v500_v39 }
 0x1db   :  { %v1052_v41 = vpop.eup %1051  ;;  %1063 = vtanh.f32 %v509_v38 }
 0x1dc   :  { %v1054_v42 = vpop.eup %1053  ;;  %1065 = vtanh.f32 %v501_v40 }
 0x1dd   :  { %v1056_v43 = vpop.eup %1055 }
 0x1de   :  { %v1058_v44 = vpop.eup %1057  ;;  %v968_v45 = vpop.f32.mrb[8].mxu1  ;;  %v840_v46 = vpack.c.bf16 %v1056_v43, %v1052_v41 }
 0x1df   :  { %v522_v47 = vadd.f32 %v968_v45, %v1313_v25  ;;  %v513_v48 = vpop.f32.mrb[9].mxu1  ;;  %v835_v49 = vpack.c.bf16 %v1058_v44, %v1054_v42 }
 0x1e0   :  { %v514_v50 = vadd.f32 %v1313_v25, %v513_v48  ;;  %v969_v51 = vpop.f32.mrb[10].mxu1  ;;  %872 = vst [vmem:[%s1385_s6 + $0x8] sm:$0xff] %v840_v46  }
 0x1e1   :  { %1067 = vtanh.f32 %v522_v47  ;;  %v525_v52 = vadd.f32 %v969_v51, %v1313_v25  ;;  %v516_v53 = vpop.f32.mrb[11].mxu1  ;;  %836 = vst [vmem:[%s1385_s6] sm:$0xff] %v835_v49   ;;  %1011 = vmatpush3.bf16.msra.mxu0 %v835_v49 }
 0x1e2   :  { %1069 = vtanh.f32 %v514_v50  ;;  %v517_v54 = vadd.f32 %v1313_v25, %v516_v53  ;;  %1012 = vmatprep.subr.bf16.mxu0 %v1134_v2 }
 0x1e3   :  { %v1060_v55 = vpop.eup %1059  ;;  %1071 = vtanh.f32 %v525_v52 }
 0x1e4   :  { %v1062_v56 = vpop.eup %1061  ;;  %1073 = vtanh.f32 %v517_v54 }
 0x1e5   :  { %v1064_v57 = vpop.eup %1063  ;;  %1014 = vmatpush3.bf16.msra.mxu0 %v840_v46 }
 0x1e6   :  { %v1066_v58 = vpop.eup %1065  ;;  %v972_v59 = vpop.f32.mrb[12].mxu1  ;;  %1015 = vmatprep.subr.bf16.mxu0 %v1134_v2  ;;  %v850_v60 = vpack.c.bf16 %v1064_v57, %v1060_v55 }
 0x1e7   :  { %v538_v61 = vadd.f32 %v972_v59, %v1313_v25  ;;  %v529_v62 = vpop.f32.mrb[13].mxu1  ;;  %v845_v63 = vpack.c.bf16 %v1066_v58, %v1062_v56 }
 0x1e8   :  { %v530_v0 = vadd.f32 %v1313_v25, %v529_v62  ;;  %v973_v3 = vpop.f32.mrb[14].mxu1  ;;  %874 = vst [vmem:[%s1385_s6 + $0x18] sm:$0xff] %v850_v60  }
 0x1e9   :  { %1075 = vtanh.f32 %v538_v61  ;;  %v541_v4 = vadd.f32 %v973_v3, %v1313_v25  ;;  %v532_v5 = vpop.f32.mrb[15].mxu1  ;;  %873 = vst [vmem:[%s1385_s6 + $0x10] sm:$0xff] %v845_v63   ;;  %1017 = vmatpush3.bf16.msra.mxu0 %v845_v63 }
 0x1ea   :  { %1077 = vtanh.f32 %v530_v0  ;;  %v533_v6 = vadd.f32 %v1313_v25, %v532_v5  ;;  %1018 = vmatprep.subr.bf16.mxu0 %v1134_v2  ;;  %v1137_v25 = vmov 1.0  }
 0x1eb   :  { %v1068_v7 = vpop.eup %1067  ;;  %1079 = vtanh.f32 %v541_v4 }
 0x1ec   :  { %v1070_v8 = vpop.eup %1069  ;;  %1081 = vtanh.f32 %v533_v6 }
 0x1ed   :  { %v1072_v9 = vpop.eup %1071  ;;  %1020 = vmatpush3.bf16.msra.mxu0 %v850_v60 }
 0x1ee   :  { %v1074_v11 = vpop.eup %1073  ;;  %1021 = vmatprep.subr.bf16.mxu0 %v1134_v2  ;;  %v860_v12 = vpack.c.bf16 %v1072_v9, %v1068_v7 }
 0x1ef   :  { %v855_v13 = vpack.c.bf16 %v1074_v11, %v1070_v8 }
 0x1f0   :  { %876 = vst [vmem:[%s1385_s6 + $0x28] sm:$0xff] %v860_v12  }
 0x1f1   :  { %875 = vst [vmem:[%s1385_s6 + $0x20] sm:$0xff] %v855_v13   ;;  %1023 = vmatpush3.bf16.msra.mxu0 %v855_v13 }
 0x1f2   :  { %1024 = vmatprep.subr.bf16.mxu0 %v1134_v2 }
 0x1f3   :  { %v1076_v14 = vpop.eup %1075 }
 0x1f4   :  { %v1078_v15 = vpop.eup %1077 }
 0x1f5   :  { %v1080_v17 = vpop.eup %1079  ;;  %1026 = vmatpush3.bf16.msra.mxu0 %v860_v12 }
 0x1f6   :  { %v1082_v19 = vpop.eup %1081  ;;  %1027 = vmatprep.subr.bf16.mxu0 %v1134_v2  ;;  %v870_v20 = vpack.c.bf16 %v1080_v17, %v1076_v14 }
 0x1f7   :  { %v865_v26 = vpack.c.bf16 %v1082_v19, %v1078_v15 }
 0x1f8   :  { %878 = vst [vmem:[%s1385_s6 + $0x38] sm:$0xff] %v870_v20  }
 0x1f9   :  { %877 = vst [vmem:[%s1385_s6 + $0x30] sm:$0xff] %v865_v26   ;;  %1029 = vmatpush3.bf16.msra.mxu0 %v865_v26 }
 0x1fa   :  { %1030 = vmatprep.subr.bf16.mxu0 %v1134_v2 }
 0x1fd   :  { %1032 = vmatpush3.bf16.msra.mxu0 %v870_v20 }
 0x200   :  { %1007 = vmatmul.mubr.msk.f32.vlgmr.msra.gmra.mrb[16].mxu0 %vm664_vm7, %v1137_v25 }
 0x201   :  { %1116 = shalt.err (!%p1113_p12)
}
 0x202   :  { %s1117_s15 = scalar_lea.hbm %s1388_s9, 128 }
 0x203   :  { %p1118_p13 = scmp.ne.s32.totalorder %s1388_s9, %s1117_s15  ;;  %p1121_p0 = scmp.lt.u32.totalorder %s1117_s15, %s1388_s9 }
 0x205   :  { %p1123_p1 = pnand %p1121_p0, %p1118_p13 }
 0x207   :  { %1126 = shalt.err (!%p1123_p1)
}
 0x208   :  { %755 = dma.vmem_to_hbm [thread:$0]  %s753_s12, 128, %s1388_s9, [#allocation4]  }
 0x2d3   :  { %v733_v1 = vpop.f32.mrb[16].mxu0 }
 0x2d4   :  { %737 = vst [vmem:[%s1387_s8] sm:$0xff] %v733_v1  ;;  %v1008_v2 = vpop.f32.mrb[17].mxu0 }
 0x2d5   :  { %1129 = dma.done.wait [#allocation4], 128  }
 0x2d6   :  { %1130 = vsyncadd [#allocation4], 4294967168 }
 0x2d7   :  { %765 = vsyncpa [#allocation3], 1 }
 0x2d8   :  { %766 = vsyncpa [#allocation4], 1 }

</bundles_post_ra>
